<compile_context>
chip_gen: v7x
topology: tpu7x:2x2x1
jax: 0.10.0
libtpu: 0.0.40
codegen_flags: <defaults>
</compile_context>

<pallas_src>
import functools
import math

import numpy as np
import jax
import jax.numpy as jnp
from jax import lax
from jax.experimental import pallas as pl
from jax.experimental.pallas import tpu as pltpu

LANES = 128
SUBLANES = 8


def simple_pgc_kernel(xp_ref, wt_ref, l0_ref, alpha_ref, out_ref, *,
                      parts, num_sub, unroll):
    """One batch tile of block_batch = num_sub*8*128 samples.

    xp_ref   : (rs, 128) int32 VMEM — bit-packed features, batch on (sublane, lane).
    wt_ref   : (m_table, d) f32 SMEM — column i = [0, softmax(W_i)...] PC table.
    l0_ref   : (d, d)       f32 SMEM — L0 = B^T B + eps*I (precomputed in wrapper).
    alpha_ref: (1, 1)       f32 SMEM — logdet(L0 + I)     (precomputed in wrapper).
    out_ref  : (rs, 128)    f32 VMEM — logdet(L_x) - alpha.
    """
    d = len(parts)

    # Batch-invariant scalars: read once per grid step, closed over by the loop body.
    alpha = alpha_ref[0, 0]
    l0 = [[l0_ref[i, j] for j in range(d)] for i in range(d)]
    leaves = [[wt_ref[k, i] for k in range(1 << len(part))]
              for i, part in enumerate(parts)]

    def sub_tile(r, carry):
        base = pl.multiple_of(r * SUBLANES, SUBLANES)
        xp = xp_ref[pl.ds(base, SUBLANES), :]                    # (8, 128) int32

        # --- Simple PCs: binary select tree over each part's bits (VPU selects only) ---
        p = []
        for i, part in enumerate(parts):
            bits = [(xp & jnp.int32(1 << f)) != 0 for f in part]  # m bit tests

            def rec(level, offset, bits=bits, i=i):
                if level < 0:
                    return leaves[i][offset]                      # SMEM scalar leaf
                lo = rec(level - 1, offset)
                hi = rec(level - 1, offset + (1 << level))
                return jnp.where(bits[level], hi, lo)             # (2^m - 1) selects

            p.append(rec(len(part) - 1, 0))                       # (8, 128) f32

        # --- L[b,i,j] = L0[i,j] * p[b,j];  diag <- 1 where (1 - p[b,j]) == 1.0 ---
        L = [[l0[i][j] * p[j] for j in range(d)] for i in range(d)]
        for j in range(d):
            L[j][j] = jnp.where((1.0 - p[j]) == 1.0, 1.0, L[j][j])

        # --- unrolled LU (no pivoting) log-determinant; dense (8,128) vreg ops.
        # Valid: leading principal minors are det(L0[S,S]) * prod(p[S]) > 0 (L0 is PD),
        # and columns with p == 0 were replaced by the corresponding unit vector.
        acc = jnp.zeros((SUBLANES, LANES), jnp.float32)
        for k in range(d):
            piv = L[k][k]
            acc = acc + jnp.log(piv)
            if k < d - 1:                                         # last inv is dead
                inv0 = pl.reciprocal(piv, approx=True)            # EUP slot
                inv = inv0 * (2.0 - piv * inv0)                   # one Newton step
                for i in range(k + 1, d):
                    factor = L[i][k] * inv
                    for j in range(k + 1, d):                     # cols <= k never read again
                        L[i][j] = L[i][j] - factor * L[k][j]

        out_ref[pl.ds(base, SUBLANES), :] = acc - alpha
        return carry

    lax.fori_loop(0, num_sub, sub_tile, 0, unroll=unroll)


def simple_pgc_forward(x_bits, partition, w_table_t, B, *, eps=1e-8, block_batch=65536):
    """x_bits: (batch, n) in {0,1}; returns (batch,) = logdet(L_x) - logdet(L0 + I)."""
    batch, n = x_bits.shape
    d = len(partition)
    assert n <= 31, "bit-packing into int32 requires n <= 31"
    assert max(len(p) for p in partition) <= 8, \
        "select tree is exponential in part size; keep parts <= 8 features"
    assert w_table_t.shape[0] >= max(1 << len(p) for p in partition)

    # Block sizing: multiple of 1024 so blocks are (8k, 128); cap to padded batch so tiny
    # inputs are not over-padded.  NOTE(v7x): for large batches prefer an even grid with
    # >= 8 steps so both TensorCores get balanced work.
    sub = SUBLANES * LANES                                     # 1024 samples per sub-tile
    min_pad = ((batch + sub - 1) // sub) * sub
    block_batch = max(sub, (block_batch // sub) * sub)
    block_batch = min(block_batch, min_pad)
    padded = ((batch + block_batch - 1) // block_batch) * block_batch
    rs = block_batch // LANES
    num_sub = rs // SUBLANES
    num_tiles = padded // block_batch
    unroll = max(1, math.gcd(num_sub, 8))                      # static, divides num_sub

    # Batch-invariant precompute (hoisted out of the kernel).
    B = B.astype(jnp.float32)
    I = jnp.eye(d, dtype=jnp.float32)
    L0 = B.T @ B + eps * I
    alpha = jnp.linalg.slogdet(L0 + I)[1].astype(jnp.float32).reshape(1, 1)

    # Bit-pack features: one int32 per sample; lane-major (rows of 128 consecutive samples).
    weights = jnp.asarray((1 << np.arange(n)).astype(np.int32))
    xp = jnp.sum(x_bits.astype(jnp.int32) * weights[None, :], axis=1).astype(jnp.int32)
    if padded != batch:
        xp = jnp.pad(xp, (0, padded - batch))                  # packed 0 -> p==0 -> L=I
    xp2 = xp.reshape(padded // LANES, LANES)

    kernel = functools.partial(
        simple_pgc_kernel,
        parts=tuple(tuple(int(f) for f in p) for p in partition),
        num_sub=num_sub, unroll=unroll)

    out2 = pl.pallas_call(
        kernel,
        out_shape=jax.ShapeDtypeStruct((padded // LANES, LANES), jnp.float32),
        grid_spec=pltpu.PrefetchScalarGridSpec(
            num_scalar_prefetch=0,
            grid=(num_tiles,),
            in_specs=[
                pl.BlockSpec((rs, LANES), lambda b: (b, 0)),           # packed x (contiguous)
                pl.BlockSpec(memory_space=pltpu.MemorySpace.SMEM),     # PC tables
                pl.BlockSpec(memory_space=pltpu.MemorySpace.SMEM),     # L0
                pl.BlockSpec(memory_space=pltpu.MemorySpace.SMEM),     # alpha
            ],
            out_specs=pl.BlockSpec((rs, LANES), lambda b: (b, 0)),     # lane-dense output
        ),
        compiler_params=pltpu.CompilerParams(dimension_semantics=("parallel",)),
    )(xp2, w_table_t.astype(jnp.float32), L0, alpha)
    return out2.reshape(padded)[:batch]


def reference_forward(x_bits, partition, W_list, B):
    """Pure-JAX mirror of SimplePGC.forward (PyTorch semantics)."""
    eps = 1e-8
    d = len(partition)
    batch = x_bits.shape[0]
    p_cols = []
    for i, part in enumerate(partition):
        mask = jnp.zeros((batch,), jnp.int32)
        for j, feat in enumerate(part):
            mask = mask + x_bits[:, feat].astype(jnp.int32) * (1 << j)
        w = jnp.concatenate([jnp.zeros((1,), jnp.float32), jax.nn.softmax(W_list[i])])
        p_cols.append(w[mask])
    p = jnp.stack(p_cols, -1)                                     # (batch, d)
    I = jnp.eye(d, dtype=jnp.float32)
    L0 = B.T @ B + eps * I
    L = L0[None, :, :] * p[:, None, :]
    diag_mask = (1.0 - p)[:, :, None] * I[None, :, :] == 1.0      # diag_embed(1-p)==1
    L = jnp.where(diag_mask, 1.0, L)
    _, y = jnp.linalg.slogdet(L)
    _, alpha = jnp.linalg.slogdet(L0 + I)
    return y - alpha


if __name__ == "__main__":
    n = 8
    partition = [[0, 1], [2, 3, 4], [5], [6, 7]]
    d = len(partition)
    batch = 2000                       # -> padded to 2048 = 1 grid step, 2 sub-tiles

    key = jax.random.PRNGKey(0)
    kb, kw, kx = jax.random.split(key, 3)

    # Deterministic synthetic parameters (mirrors SimplePGC.__init__ with x=None).
    B = jax.random.normal(kb, (d, d), jnp.float32)
    B = B / jnp.linalg.norm(B, axis=0, keepdims=True)             # column-normalize
    wkeys = jax.random.split(kw, d)
    W_list = [jax.random.normal(wkeys[i], (2 ** len(part) - 1,), jnp.float32)
              for i, part in enumerate(partition)]

    # Dense per-part PC tables: column i, row k = value of part i's PC at mask==k.
    m_table = max(1 << len(part) for part in partition)
    wT_np = np.zeros((m_table, d), np.float32)                    # row 0 stays 0 (= w[0])
    for i, part in enumerate(partition):
        w = np.asarray(jax.nn.softmax(W_list[i]))
        wT_np[1:1 + w.shape[0], i] = w
    wT = jnp.asarray(wT_np)

    # Binary inputs; force one all-zero row so the p==0 diag-fix path is exercised.
    x = jax.random.bernoulli(kx, 0.5, (batch, n)).astype(jnp.int32)
    x = x.at[0].set(0)

    out = jax.block_until_ready(simple_pgc_forward(x, partition, wT, B))

    ref = reference_forward(x, partition, W_list, B)
    np.testing.assert_allclose(np.asarray(out), np.asarray(ref), rtol=2e-3, atol=2e-3)
    print("KERNEL_OK")
</pallas_src>

<mosaic_0001>
module attributes {stable_mosaic.version = 11 : i64} {
  func.func @simple_pgc_kernel(%arg0: i32, %arg1: memref<16x128xi32, #tpu.memory_space<vmem>>, %arg2: memref<8x4xf32, #tpu.memory_space<smem>>, %arg3: memref<4x4xf32, #tpu.memory_space<smem>>, %arg4: memref<1x1xf32, #tpu.memory_space<smem>>, %arg5: memref<16x128xf32, #tpu.memory_space<vmem>>) attributes {dimension_semantics = [#tpu.dimension_semantics<parallel>], iteration_bounds = array<i64: 1>, scalar_prefetch = 0 : i64, scratch_operands = 0 : i64, tpu.core_type = #tpu.core_type<tc>, window_params = [{transform_indices = @transform_0, window_bounds = array<i64: 16, 128>}, {transform_indices = @transform_1, window_bounds = array<i64: 8, 4>}, {transform_indices = @transform_2, window_bounds = array<i64: 4, 4>}, {transform_indices = @transform_3, window_bounds = array<i64: 1, 1>}, {transform_indices = @transform_4, window_bounds = array<i64: 16, 128>}]} {
    %c0 = arith.constant 0 : index
    %c0_0 = arith.constant 0 : index
    %0 = memref.load %arg4[%c0, %c0_0] : memref<1x1xf32, #tpu.memory_space<smem>>
    %c0_1 = arith.constant 0 : index
    %c0_2 = arith.constant 0 : index
    %1 = memref.load %arg3[%c0_1, %c0_2] : memref<4x4xf32, #tpu.memory_space<smem>>
    %c0_3 = arith.constant 0 : index
    %c1 = arith.constant 1 : index
    %2 = memref.load %arg3[%c0_3, %c1] : memref<4x4xf32, #tpu.memory_space<smem>>
    %c0_4 = arith.constant 0 : index
    %c2 = arith.constant 2 : index
    %3 = memref.load %arg3[%c0_4, %c2] : memref<4x4xf32, #tpu.memory_space<smem>>
    %c0_5 = arith.constant 0 : index
    %c3 = arith.constant 3 : index
    %4 = memref.load %arg3[%c0_5, %c3] : memref<4x4xf32, #tpu.memory_space<smem>>
    %c1_6 = arith.constant 1 : index
    %c0_7 = arith.constant 0 : index
    %5 = memref.load %arg3[%c1_6, %c0_7] : memref<4x4xf32, #tpu.memory_space<smem>>
    %c1_8 = arith.constant 1 : index
    %c1_9 = arith.constant 1 : index
    %6 = memref.load %arg3[%c1_8, %c1_9] : memref<4x4xf32, #tpu.memory_space<smem>>
    %c1_10 = arith.constant 1 : index
    %c2_11 = arith.constant 2 : index
    %7 = memref.load %arg3[%c1_10, %c2_11] : memref<4x4xf32, #tpu.memory_space<smem>>
    %c1_12 = arith.constant 1 : index
    %c3_13 = arith.constant 3 : index
    %8 = memref.load %arg3[%c1_12, %c3_13] : memref<4x4xf32, #tpu.memory_space<smem>>
    %c2_14 = arith.constant 2 : index
    %c0_15 = arith.constant 0 : index
    %9 = memref.load %arg3[%c2_14, %c0_15] : memref<4x4xf32, #tpu.memory_space<smem>>
    %c2_16 = arith.constant 2 : index
    %c1_17 = arith.constant 1 : index
    %10 = memref.load %arg3[%c2_16, %c1_17] : memref<4x4xf32, #tpu.memory_space<smem>>
    %c2_18 = arith.constant 2 : index
    %c2_19 = arith.constant 2 : index
    %11 = memref.load %arg3[%c2_18, %c2_19] : memref<4x4xf32, #tpu.memory_space<smem>>
    %c2_20 = arith.constant 2 : index
    %c3_21 = arith.constant 3 : index
    %12 = memref.load %arg3[%c2_20, %c3_21] : memref<4x4xf32, #tpu.memory_space<smem>>
    %c3_22 = arith.constant 3 : index
    %c0_23 = arith.constant 0 : index
    %13 = memref.load %arg3[%c3_22, %c0_23] : memref<4x4xf32, #tpu.memory_space<smem>>
    %c3_24 = arith.constant 3 : index
    %c1_25 = arith.constant 1 : index
    %14 = memref.load %arg3[%c3_24, %c1_25] : memref<4x4xf32, #tpu.memory_space<smem>>
    %c3_26 = arith.constant 3 : index
    %c2_27 = arith.constant 2 : index
    %15 = memref.load %arg3[%c3_26, %c2_27] : memref<4x4xf32, #tpu.memory_space<smem>>
    %c3_28 = arith.constant 3 : index
    %c3_29 = arith.constant 3 : index
    %16 = memref.load %arg3[%c3_28, %c3_29] : memref<4x4xf32, #tpu.memory_space<smem>>
    %c0_30 = arith.constant 0 : index
    %c0_31 = arith.constant 0 : index
    %17 = memref.load %arg2[%c0_30, %c0_31] : memref<8x4xf32, #tpu.memory_space<smem>>
    %c1_32 = arith.constant 1 : index
    %c0_33 = arith.constant 0 : index
    %18 = memref.load %arg2[%c1_32, %c0_33] : memref<8x4xf32, #tpu.memory_space<smem>>
    %c2_34 = arith.constant 2 : index
    %c0_35 = arith.constant 0 : index
    %19 = memref.load %arg2[%c2_34, %c0_35] : memref<8x4xf32, #tpu.memory_space<smem>>
    %c3_36 = arith.constant 3 : index
    %c0_37 = arith.constant 0 : index
    %20 = memref.load %arg2[%c3_36, %c0_37] : memref<8x4xf32, #tpu.memory_space<smem>>
    %c0_38 = arith.constant 0 : index
    %c1_39 = arith.constant 1 : index
    %21 = memref.load %arg2[%c0_38, %c1_39] : memref<8x4xf32, #tpu.memory_space<smem>>
    %c1_40 = arith.constant 1 : index
    %c1_41 = arith.constant 1 : index
    %22 = memref.load %arg2[%c1_40, %c1_41] : memref<8x4xf32, #tpu.memory_space<smem>>
    %c2_42 = arith.constant 2 : index
    %c1_43 = arith.constant 1 : index
    %23 = memref.load %arg2[%c2_42, %c1_43] : memref<8x4xf32, #tpu.memory_space<smem>>
    %c3_44 = arith.constant 3 : index
    %c1_45 = arith.constant 1 : index
    %24 = memref.load %arg2[%c3_44, %c1_45] : memref<8x4xf32, #tpu.memory_space<smem>>
    %c4 = arith.constant 4 : index
    %c1_46 = arith.constant 1 : index
    %25 = memref.load %arg2[%c4, %c1_46] : memref<8x4xf32, #tpu.memory_space<smem>>
    %c5 = arith.constant 5 : index
    %c1_47 = arith.constant 1 : index
    %26 = memref.load %arg2[%c5, %c1_47] : memref<8x4xf32, #tpu.memory_space<smem>>
    %c6 = arith.constant 6 : index
    %c1_48 = arith.constant 1 : index
    %27 = memref.load %arg2[%c6, %c1_48] : memref<8x4xf32, #tpu.memory_space<smem>>
    %c7 = arith.constant 7 : index
    %c1_49 = arith.constant 1 : index
    %28 = memref.load %arg2[%c7, %c1_49] : memref<8x4xf32, #tpu.memory_space<smem>>
    %c0_50 = arith.constant 0 : index
    %c2_51 = arith.constant 2 : index
    %29 = memref.load %arg2[%c0_50, %c2_51] : memref<8x4xf32, #tpu.memory_space<smem>>
    %c1_52 = arith.constant 1 : index
    %c2_53 = arith.constant 2 : index
    %30 = memref.load %arg2[%c1_52, %c2_53] : memref<8x4xf32, #tpu.memory_space<smem>>
    %c0_54 = arith.constant 0 : index
    %c3_55 = arith.constant 3 : index
    %31 = memref.load %arg2[%c0_54, %c3_55] : memref<8x4xf32, #tpu.memory_space<smem>>
    %c1_56 = arith.constant 1 : index
    %c3_57 = arith.constant 3 : index
    %32 = memref.load %arg2[%c1_56, %c3_57] : memref<8x4xf32, #tpu.memory_space<smem>>
    %c2_58 = arith.constant 2 : index
    %c3_59 = arith.constant 3 : index
    %33 = memref.load %arg2[%c2_58, %c3_59] : memref<8x4xf32, #tpu.memory_space<smem>>
    %c3_60 = arith.constant 3 : index
    %c3_61 = arith.constant 3 : index
    %34 = memref.load %arg2[%c3_60, %c3_61] : memref<8x4xf32, #tpu.memory_space<smem>>
    %c0_i32 = arith.constant 0 : i32
    %c8_i32 = arith.constant 8 : i32
    %35 = arith.muli %c0_i32, %c8_i32 : i32
    %36 = tpu.assume_multiple %35, 8 : i32
    %37 = arith.index_cast %36 : i32 to index
    %c0_62 = arith.constant 0 : index
    %38 = vector.load %arg1[%37, %c0_62] : memref<16x128xi32, #tpu.memory_space<vmem>>, vector<8x128xi32>
    %c1_i32 = arith.constant 1 : i32
    %39 = vector.broadcast %c1_i32 : i32 to vector<8x128xi32>
    %40 = arith.andi %38, %39 : vector<8x128xi32>
    %c0_i32_63 = arith.constant 0 : i32
    %41 = vector.broadcast %c0_i32_63 : i32 to vector<8x128xi32>
    %42 = arith.cmpi ne, %40, %41 : vector<8x128xi32>
    %c2_i32 = arith.constant 2 : i32
    %43 = vector.broadcast %c2_i32 : i32 to vector<8x128xi32>
    %44 = arith.andi %38, %43 : vector<8x128xi32>
    %c0_i32_64 = arith.constant 0 : i32
    %45 = vector.broadcast %c0_i32_64 : i32 to vector<8x128xi32>
    %46 = arith.cmpi ne, %44, %45 : vector<8x128xi32>
    %47 = vector.broadcast %18 : f32 to vector<8x128xf32>
    %48 = vector.broadcast %17 : f32 to vector<8x128xf32>
    %49 = arith.select %42, %47, %48 : vector<8x128xi1>, vector<8x128xf32>
    %50 = vector.broadcast %20 : f32 to vector<8x128xf32>
    %51 = vector.broadcast %19 : f32 to vector<8x128xf32>
    %52 = arith.select %42, %50, %51 : vector<8x128xi1>, vector<8x128xf32>
    %53 = arith.select %46, %52, %49 : vector<8x128xi1>, vector<8x128xf32>
    %c4_i32 = arith.constant 4 : i32
    %54 = vector.broadcast %c4_i32 : i32 to vector<8x128xi32>
    %55 = arith.andi %38, %54 : vector<8x128xi32>
    %c0_i32_65 = arith.constant 0 : i32
    %56 = vector.broadcast %c0_i32_65 : i32 to vector<8x128xi32>
    %57 = arith.cmpi ne, %55, %56 : vector<8x128xi32>
    %c8_i32_66 = arith.constant 8 : i32
    %58 = vector.broadcast %c8_i32_66 : i32 to vector<8x128xi32>
    %59 = arith.andi %38, %58 : vector<8x128xi32>
    %c0_i32_67 = arith.constant 0 : i32
    %60 = vector.broadcast %c0_i32_67 : i32 to vector<8x128xi32>
    %61 = arith.cmpi ne, %59, %60 : vector<8x128xi32>
    %c16_i32 = arith.constant 16 : i32
    %62 = vector.broadcast %c16_i32 : i32 to vector<8x128xi32>
    %63 = arith.andi %38, %62 : vector<8x128xi32>
    %c0_i32_68 = arith.constant 0 : i32
    %64 = vector.broadcast %c0_i32_68 : i32 to vector<8x128xi32>
    %65 = arith.cmpi ne, %63, %64 : vector<8x128xi32>
    %66 = vector.broadcast %22 : f32 to vector<8x128xf32>
    %67 = vector.broadcast %21 : f32 to vector<8x128xf32>
    %68 = arith.select %57, %66, %67 : vector<8x128xi1>, vector<8x128xf32>
    %69 = vector.broadcast %24 : f32 to vector<8x128xf32>
    %70 = vector.broadcast %23 : f32 to vector<8x128xf32>
    %71 = arith.select %57, %69, %70 : vector<8x128xi1>, vector<8x128xf32>
    %72 = arith.select %61, %71, %68 : vector<8x128xi1>, vector<8x128xf32>
    %73 = vector.broadcast %26 : f32 to vector<8x128xf32>
    %74 = vector.broadcast %25 : f32 to vector<8x128xf32>
    %75 = arith.select %57, %73, %74 : vector<8x128xi1>, vector<8x128xf32>
    %76 = vector.broadcast %28 : f32 to vector<8x128xf32>
    %77 = vector.broadcast %27 : f32 to vector<8x128xf32>
    %78 = arith.select %57, %76, %77 : vector<8x128xi1>, vector<8x128xf32>
    %79 = arith.select %61, %78, %75 : vector<8x128xi1>, vector<8x128xf32>
    %80 = arith.select %65, %79, %72 : vector<8x128xi1>, vector<8x128xf32>
    %c32_i32 = arith.constant 32 : i32
    %81 = vector.broadcast %c32_i32 : i32 to vector<8x128xi32>
    %82 = arith.andi %38, %81 : vector<8x128xi32>
    %c0_i32_69 = arith.constant 0 : i32
    %83 = vector.broadcast %c0_i32_69 : i32 to vector<8x128xi32>
    %84 = arith.cmpi ne, %82, %83 : vector<8x128xi32>
    %85 = vector.broadcast %30 : f32 to vector<8x128xf32>
    %86 = vector.broadcast %29 : f32 to vector<8x128xf32>
    %87 = arith.select %84, %85, %86 : vector<8x128xi1>, vector<8x128xf32>
    %c64_i32 = arith.constant 64 : i32
    %88 = vector.broadcast %c64_i32 : i32 to vector<8x128xi32>
    %89 = arith.andi %38, %88 : vector<8x128xi32>
    %c0_i32_70 = arith.constant 0 : i32
    %90 = vector.broadcast %c0_i32_70 : i32 to vector<8x128xi32>
    %91 = arith.cmpi ne, %89, %90 : vector<8x128xi32>
    %c128_i32 = arith.constant 128 : i32
    %92 = vector.broadcast %c128_i32 : i32 to vector<8x128xi32>
    %93 = arith.andi %38, %92 : vector<8x128xi32>
    %c0_i32_71 = arith.constant 0 : i32
    %94 = vector.broadcast %c0_i32_71 : i32 to vector<8x128xi32>
    %95 = arith.cmpi ne, %93, %94 : vector<8x128xi32>
    %96 = vector.broadcast %32 : f32 to vector<8x128xf32>
    %97 = vector.broadcast %31 : f32 to vector<8x128xf32>
    %98 = arith.select %91, %96, %97 : vector<8x128xi1>, vector<8x128xf32>
    %99 = vector.broadcast %34 : f32 to vector<8x128xf32>
    %100 = vector.broadcast %33 : f32 to vector<8x128xf32>
    %101 = arith.select %91, %99, %100 : vector<8x128xi1>, vector<8x128xf32>
    %102 = arith.select %95, %101, %98 : vector<8x128xi1>, vector<8x128xf32>
    %103 = vector.broadcast %1 : f32 to vector<8x128xf32>
    %104 = arith.mulf %103, %53 : vector<8x128xf32>
    %105 = vector.broadcast %2 : f32 to vector<8x128xf32>
    %106 = arith.mulf %105, %80 : vector<8x128xf32>
    %107 = vector.broadcast %3 : f32 to vector<8x128xf32>
    %108 = arith.mulf %107, %87 : vector<8x128xf32>
    %109 = vector.broadcast %4 : f32 to vector<8x128xf32>
    %110 = arith.mulf %109, %102 : vector<8x128xf32>
    %111 = vector.broadcast %5 : f32 to vector<8x128xf32>
    %112 = arith.mulf %111, %53 : vector<8x128xf32>
    %113 = vector.broadcast %6 : f32 to vector<8x128xf32>
    %114 = arith.mulf %113, %80 : vector<8x128xf32>
    %115 = vector.broadcast %7 : f32 to vector<8x128xf32>
    %116 = arith.mulf %115, %87 : vector<8x128xf32>
    %117 = vector.broadcast %8 : f32 to vector<8x128xf32>
    %118 = arith.mulf %117, %102 : vector<8x128xf32>
    %119 = vector.broadcast %9 : f32 to vector<8x128xf32>
    %120 = arith.mulf %119, %53 : vector<8x128xf32>
    %121 = vector.broadcast %10 : f32 to vector<8x128xf32>
    %122 = arith.mulf %121, %80 : vector<8x128xf32>
    %123 = vector.broadcast %11 : f32 to vector<8x128xf32>
    %124 = arith.mulf %123, %87 : vector<8x128xf32>
    %125 = vector.broadcast %12 : f32 to vector<8x128xf32>
    %126 = arith.mulf %125, %102 : vector<8x128xf32>
    %127 = vector.broadcast %13 : f32 to vector<8x128xf32>
    %128 = arith.mulf %127, %53 : vector<8x128xf32>
    %129 = vector.broadcast %14 : f32 to vector<8x128xf32>
    %130 = arith.mulf %129, %80 : vector<8x128xf32>
    %131 = vector.broadcast %15 : f32 to vector<8x128xf32>
    %132 = arith.mulf %131, %87 : vector<8x128xf32>
    %133 = vector.broadcast %16 : f32 to vector<8x128xf32>
    %134 = arith.mulf %133, %102 : vector<8x128xf32>
    %cst = arith.constant 1.000000e+00 : f32
    %135 = vector.broadcast %cst : f32 to vector<8x128xf32>
    %136 = arith.subf %135, %53 : vector<8x128xf32>
    %cst_72 = arith.constant 1.000000e+00 : f32
    %137 = vector.broadcast %cst_72 : f32 to vector<8x128xf32>
    %138 = arith.cmpf oeq, %136, %137 : vector<8x128xf32>
    %cst_73 = arith.constant 1.000000e+00 : f32
    %139 = vector.broadcast %cst_73 : f32 to vector<8x128xf32>
    %140 = arith.select %138, %139, %104 : vector<8x128xi1>, vector<8x128xf32>
    %cst_74 = arith.constant 1.000000e+00 : f32
    %141 = vector.broadcast %cst_74 : f32 to vector<8x128xf32>
    %142 = arith.subf %141, %80 : vector<8x128xf32>
    %cst_75 = arith.constant 1.000000e+00 : f32
    %143 = vector.broadcast %cst_75 : f32 to vector<8x128xf32>
    %144 = arith.cmpf oeq, %142, %143 : vector<8x128xf32>
    %cst_76 = arith.constant 1.000000e+00 : f32
    %145 = vector.broadcast %cst_76 : f32 to vector<8x128xf32>
    %146 = arith.select %144, %145, %114 : vector<8x128xi1>, vector<8x128xf32>
    %cst_77 = arith.constant 1.000000e+00 : f32
    %147 = vector.broadcast %cst_77 : f32 to vector<8x128xf32>
    %148 = arith.subf %147, %87 : vector<8x128xf32>
    %cst_78 = arith.constant 1.000000e+00 : f32
    %149 = vector.broadcast %cst_78 : f32 to vector<8x128xf32>
    %150 = arith.cmpf oeq, %148, %149 : vector<8x128xf32>
    %cst_79 = arith.constant 1.000000e+00 : f32
    %151 = vector.broadcast %cst_79 : f32 to vector<8x128xf32>
    %152 = arith.select %150, %151, %124 : vector<8x128xi1>, vector<8x128xf32>
    %cst_80 = arith.constant 1.000000e+00 : f32
    %153 = vector.broadcast %cst_80 : f32 to vector<8x128xf32>
    %154 = arith.subf %153, %102 : vector<8x128xf32>
    %cst_81 = arith.constant 1.000000e+00 : f32
    %155 = vector.broadcast %cst_81 : f32 to vector<8x128xf32>
    %156 = arith.cmpf oeq, %154, %155 : vector<8x128xf32>
    %cst_82 = arith.constant 1.000000e+00 : f32
    %157 = vector.broadcast %cst_82 : f32 to vector<8x128xf32>
    %158 = arith.select %156, %157, %134 : vector<8x128xi1>, vector<8x128xf32>
    %cst_83 = arith.constant 0.000000e+00 : f32
    %159 = vector.broadcast %cst_83 : f32 to vector<8x128xf32>
    %160 = math.log %140 : vector<8x128xf32>
    %161 = arith.addf %159, %160 : vector<8x128xf32>
    %162 = tpu.reciprocal %140 {approx = true} : vector<8x128xf32> -> vector<8x128xf32>
    %163 = arith.mulf %140, %162 : vector<8x128xf32>
    %cst_84 = arith.constant 2.000000e+00 : f32
    %164 = vector.broadcast %cst_84 : f32 to vector<8x128xf32>
    %165 = arith.subf %164, %163 : vector<8x128xf32>
    %166 = arith.mulf %162, %165 : vector<8x128xf32>
    %167 = arith.mulf %112, %166 : vector<8x128xf32>
    %168 = arith.mulf %167, %106 : vector<8x128xf32>
    %169 = arith.subf %146, %168 : vector<8x128xf32>
    %170 = arith.mulf %167, %108 : vector<8x128xf32>
    %171 = arith.subf %116, %170 : vector<8x128xf32>
    %172 = arith.mulf %167, %110 : vector<8x128xf32>
    %173 = arith.subf %118, %172 : vector<8x128xf32>
    %174 = arith.mulf %120, %166 : vector<8x128xf32>
    %175 = arith.mulf %174, %106 : vector<8x128xf32>
    %176 = arith.subf %122, %175 : vector<8x128xf32>
    %177 = arith.mulf %174, %108 : vector<8x128xf32>
    %178 = arith.subf %152, %177 : vector<8x128xf32>
    %179 = arith.mulf %174, %110 : vector<8x128xf32>
    %180 = arith.subf %126, %179 : vector<8x128xf32>
    %181 = arith.mulf %128, %166 : vector<8x128xf32>
    %182 = arith.mulf %181, %106 : vector<8x128xf32>
    %183 = arith.subf %130, %182 : vector<8x128xf32>
    %184 = arith.mulf %181, %108 : vector<8x128xf32>
    %185 = arith.subf %132, %184 : vector<8x128xf32>
    %186 = arith.mulf %181, %110 : vector<8x128xf32>
    %187 = arith.subf %158, %186 : vector<8x128xf32>
    %188 = math.log %169 : vector<8x128xf32>
    %189 = arith.addf %161, %188 : vector<8x128xf32>
    %190 = tpu.reciprocal %169 {approx = true} : vector<8x128xf32> -> vector<8x128xf32>
    %191 = arith.mulf %169, %190 : vector<8x128xf32>
    %cst_85 = arith.constant 2.000000e+00 : f32
    %192 = vector.broadcast %cst_85 : f32 to vector<8x128xf32>
    %193 = arith.subf %192, %191 : vector<8x128xf32>
    %194 = arith.mulf %190, %193 : vector<8x128xf32>
    %195 = arith.mulf %176, %194 : vector<8x128xf32>
    %196 = arith.mulf %195, %171 : vector<8x128xf32>
    %197 = arith.subf %178, %196 : vector<8x128xf32>
    %198 = arith.mulf %195, %173 : vector<8x128xf32>
    %199 = arith.subf %180, %198 : vector<8x128xf32>
    %200 = arith.mulf %183, %194 : vector<8x128xf32>
    %201 = arith.mulf %200, %171 : vector<8x128xf32>
    %202 = arith.subf %185, %201 : vector<8x128xf32>
    %203 = arith.mulf %200, %173 : vector<8x128xf32>
    %204 = arith.subf %187, %203 : vector<8x128xf32>
    %205 = math.log %197 : vector<8x128xf32>
    %206 = arith.addf %189, %205 : vector<8x128xf32>
    %207 = tpu.reciprocal %197 {approx = true} : vector<8x128xf32> -> vector<8x128xf32>
    %208 = arith.mulf %197, %207 : vector<8x128xf32>
    %cst_86 = arith.constant 2.000000e+00 : f32
    %209 = vector.broadcast %cst_86 : f32 to vector<8x128xf32>
    %210 = arith.subf %209, %208 : vector<8x128xf32>
    %211 = arith.mulf %207, %210 : vector<8x128xf32>
    %212 = arith.mulf %202, %211 : vector<8x128xf32>
    %213 = arith.mulf %212, %199 : vector<8x128xf32>
    %214 = arith.subf %204, %213 : vector<8x128xf32>
    %215 = math.log %214 : vector<8x128xf32>
    %216 = arith.addf %206, %215 : vector<8x128xf32>
    %217 = vector.broadcast %0 : f32 to vector<8x128xf32>
    %218 = arith.subf %216, %217 : vector<8x128xf32>
    %219 = arith.index_cast %36 : i32 to index
    %c0_87 = arith.constant 0 : index
    %220 = vector.load %arg5[%219, %c0_87] : memref<16x128xf32, #tpu.memory_space<vmem>>, vector<8x128xf32>
    tpu.vector_store %arg5[%219, %c0_87], %218 {strides = array<i32>} : memref<16x128xf32, #tpu.memory_space<vmem>>, vector<8x128xf32>,
    %c1_i32_88 = arith.constant 1 : i32
    %c8_i32_89 = arith.constant 8 : i32
    %221 = arith.muli %c1_i32_88, %c8_i32_89 : i32
    %222 = tpu.assume_multiple %221, 8 : i32
    %223 = arith.index_cast %222 : i32 to index
    %c0_90 = arith.constant 0 : index
    %224 = vector.load %arg1[%223, %c0_90] : memref<16x128xi32, #tpu.memory_space<vmem>>, vector<8x128xi32>
    %c1_i32_91 = arith.constant 1 : i32
    %225 = vector.broadcast %c1_i32_91 : i32 to vector<8x128xi32>
    %226 = arith.andi %224, %225 : vector<8x128xi32>
    %c0_i32_92 = arith.constant 0 : i32
    %227 = vector.broadcast %c0_i32_92 : i32 to vector<8x128xi32>
    %228 = arith.cmpi ne, %226, %227 : vector<8x128xi32>
    %c2_i32_93 = arith.constant 2 : i32
    %229 = vector.broadcast %c2_i32_93 : i32 to vector<8x128xi32>
    %230 = arith.andi %224, %229 : vector<8x128xi32>
    %c0_i32_94 = arith.constant 0 : i32
    %231 = vector.broadcast %c0_i32_94 : i32 to vector<8x128xi32>
    %232 = arith.cmpi ne, %230, %231 : vector<8x128xi32>
    %233 = vector.broadcast %18 : f32 to vector<8x128xf32>
    %234 = vector.broadcast %17 : f32 to vector<8x128xf32>
    %235 = arith.select %228, %233, %234 : vector<8x128xi1>, vector<8x128xf32>
    %236 = vector.broadcast %20 : f32 to vector<8x128xf32>
    %237 = vector.broadcast %19 : f32 to vector<8x128xf32>
    %238 = arith.select %228, %236, %237 : vector<8x128xi1>, vector<8x128xf32>
    %239 = arith.select %232, %238, %235 : vector<8x128xi1>, vector<8x128xf32>
    %c4_i32_95 = arith.constant 4 : i32
    %240 = vector.broadcast %c4_i32_95 : i32 to vector<8x128xi32>
    %241 = arith.andi %224, %240 : vector<8x128xi32>
    %c0_i32_96 = arith.constant 0 : i32
    %242 = vector.broadcast %c0_i32_96 : i32 to vector<8x128xi32>
    %243 = arith.cmpi ne, %241, %242 : vector<8x128xi32>
    %c8_i32_97 = arith.constant 8 : i32
    %244 = vector.broadcast %c8_i32_97 : i32 to vector<8x128xi32>
    %245 = arith.andi %224, %244 : vector<8x128xi32>
    %c0_i32_98 = arith.constant 0 : i32
    %246 = vector.broadcast %c0_i32_98 : i32 to vector<8x128xi32>
    %247 = arith.cmpi ne, %245, %246 : vector<8x128xi32>
    %c16_i32_99 = arith.constant 16 : i32
    %248 = vector.broadcast %c16_i32_99 : i32 to vector<8x128xi32>
    %249 = arith.andi %224, %248 : vector<8x128xi32>
    %c0_i32_100 = arith.constant 0 : i32
    %250 = vector.broadcast %c0_i32_100 : i32 to vector<8x128xi32>
    %251 = arith.cmpi ne, %249, %250 : vector<8x128xi32>
    %252 = vector.broadcast %22 : f32 to vector<8x128xf32>
    %253 = vector.broadcast %21 : f32 to vector<8x128xf32>
    %254 = arith.select %243, %252, %253 : vector<8x128xi1>, vector<8x128xf32>
    %255 = vector.broadcast %24 : f32 to vector<8x128xf32>
    %256 = vector.broadcast %23 : f32 to vector<8x128xf32>
    %257 = arith.select %243, %255, %256 : vector<8x128xi1>, vector<8x128xf32>
    %258 = arith.select %247, %257, %254 : vector<8x128xi1>, vector<8x128xf32>
    %259 = vector.broadcast %26 : f32 to vector<8x128xf32>
    %260 = vector.broadcast %25 : f32 to vector<8x128xf32>
    %261 = arith.select %243, %259, %260 : vector<8x128xi1>, vector<8x128xf32>
    %262 = vector.broadcast %28 : f32 to vector<8x128xf32>
    %263 = vector.broadcast %27 : f32 to vector<8x128xf32>
    %264 = arith.select %243, %262, %263 : vector<8x128xi1>, vector<8x128xf32>
    %265 = arith.select %247, %264, %261 : vector<8x128xi1>, vector<8x128xf32>
    %266 = arith.select %251, %265, %258 : vector<8x128xi1>, vector<8x128xf32>
    %c32_i32_101 = arith.constant 32 : i32
    %267 = vector.broadcast %c32_i32_101 : i32 to vector<8x128xi32>
    %268 = arith.andi %224, %267 : vector<8x128xi32>
    %c0_i32_102 = arith.constant 0 : i32
    %269 = vector.broadcast %c0_i32_102 : i32 to vector<8x128xi32>
    %270 = arith.cmpi ne, %268, %269 : vector<8x128xi32>
    %271 = vector.broadcast %30 : f32 to vector<8x128xf32>
    %272 = vector.broadcast %29 : f32 to vector<8x128xf32>
    %273 = arith.select %270, %271, %272 : vector<8x128xi1>, vector<8x128xf32>
    %c64_i32_103 = arith.constant 64 : i32
    %274 = vector.broadcast %c64_i32_103 : i32 to vector<8x128xi32>
    %275 = arith.andi %224, %274 : vector<8x128xi32>
    %c0_i32_104 = arith.constant 0 : i32
    %276 = vector.broadcast %c0_i32_104 : i32 to vector<8x128xi32>
    %277 = arith.cmpi ne, %275, %276 : vector<8x128xi32>
    %c128_i32_105 = arith.constant 128 : i32
    %278 = vector.broadcast %c128_i32_105 : i32 to vector<8x128xi32>
    %279 = arith.andi %224, %278 : vector<8x128xi32>
    %c0_i32_106 = arith.constant 0 : i32
    %280 = vector.broadcast %c0_i32_106 : i32 to vector<8x128xi32>
    %281 = arith.cmpi ne, %279, %280 : vector<8x128xi32>
    %282 = vector.broadcast %32 : f32 to vector<8x128xf32>
    %283 = vector.broadcast %31 : f32 to vector<8x128xf32>
    %284 = arith.select %277, %282, %283 : vector<8x128xi1>, vector<8x128xf32>
    %285 = vector.broadcast %34 : f32 to vector<8x128xf32>
    %286 = vector.broadcast %33 : f32 to vector<8x128xf32>
    %287 = arith.select %277, %285, %286 : vector<8x128xi1>, vector<8x128xf32>
    %288 = arith.select %281, %287, %284 : vector<8x128xi1>, vector<8x128xf32>
    %289 = vector.broadcast %1 : f32 to vector<8x128xf32>
    %290 = arith.mulf %289, %239 : vector<8x128xf32>
    %291 = vector.broadcast %2 : f32 to vector<8x128xf32>
    %292 = arith.mulf %291, %266 : vector<8x128xf32>
    %293 = vector.broadcast %3 : f32 to vector<8x128xf32>
    %294 = arith.mulf %293, %273 : vector<8x128xf32>
    %295 = vector.broadcast %4 : f32 to vector<8x128xf32>
    %296 = arith.mulf %295, %288 : vector<8x128xf32>
    %297 = vector.broadcast %5 : f32 to vector<8x128xf32>
    %298 = arith.mulf %297, %239 : vector<8x128xf32>
    %299 = vector.broadcast %6 : f32 to vector<8x128xf32>
    %300 = arith.mulf %299, %266 : vector<8x128xf32>
    %301 = vector.broadcast %7 : f32 to vector<8x128xf32>
    %302 = arith.mulf %301, %273 : vector<8x128xf32>
    %303 = vector.broadcast %8 : f32 to vector<8x128xf32>
    %304 = arith.mulf %303, %288 : vector<8x128xf32>
    %305 = vector.broadcast %9 : f32 to vector<8x128xf32>
    %306 = arith.mulf %305, %239 : vector<8x128xf32>
    %307 = vector.broadcast %10 : f32 to vector<8x128xf32>
    %308 = arith.mulf %307, %266 : vector<8x128xf32>
    %309 = vector.broadcast %11 : f32 to vector<8x128xf32>
    %310 = arith.mulf %309, %273 : vector<8x128xf32>
    %311 = vector.broadcast %12 : f32 to vector<8x128xf32>
    %312 = arith.mulf %311, %288 : vector<8x128xf32>
    %313 = vector.broadcast %13 : f32 to vector<8x128xf32>
    %314 = arith.mulf %313, %239 : vector<8x128xf32>
    %315 = vector.broadcast %14 : f32 to vector<8x128xf32>
    %316 = arith.mulf %315, %266 : vector<8x128xf32>
    %317 = vector.broadcast %15 : f32 to vector<8x128xf32>
    %318 = arith.mulf %317, %273 : vector<8x128xf32>
    %319 = vector.broadcast %16 : f32 to vector<8x128xf32>
    %320 = arith.mulf %319, %288 : vector<8x128xf32>
    %cst_107 = arith.constant 1.000000e+00 : f32
    %321 = vector.broadcast %cst_107 : f32 to vector<8x128xf32>
    %322 = arith.subf %321, %239 : vector<8x128xf32>
    %cst_108 = arith.constant 1.000000e+00 : f32
    %323 = vector.broadcast %cst_108 : f32 to vector<8x128xf32>
    %324 = arith.cmpf oeq, %322, %323 : vector<8x128xf32>
    %cst_109 = arith.constant 1.000000e+00 : f32
    %325 = vector.broadcast %cst_109 : f32 to vector<8x128xf32>
    %326 = arith.select %324, %325, %290 : vector<8x128xi1>, vector<8x128xf32>
    %cst_110 = arith.constant 1.000000e+00 : f32
    %327 = vector.broadcast %cst_110 : f32 to vector<8x128xf32>
    %328 = arith.subf %327, %266 : vector<8x128xf32>
    %cst_111 = arith.constant 1.000000e+00 : f32
    %329 = vector.broadcast %cst_111 : f32 to vector<8x128xf32>
    %330 = arith.cmpf oeq, %328, %329 : vector<8x128xf32>
    %cst_112 = arith.constant 1.000000e+00 : f32
    %331 = vector.broadcast %cst_112 : f32 to vector<8x128xf32>
    %332 = arith.select %330, %331, %300 : vector<8x128xi1>, vector<8x128xf32>
    %cst_113 = arith.constant 1.000000e+00 : f32
    %333 = vector.broadcast %cst_113 : f32 to vector<8x128xf32>
    %334 = arith.subf %333, %273 : vector<8x128xf32>
    %cst_114 = arith.constant 1.000000e+00 : f32
    %335 = vector.broadcast %cst_114 : f32 to vector<8x128xf32>
    %336 = arith.cmpf oeq, %334, %335 : vector<8x128xf32>
    %cst_115 = arith.constant 1.000000e+00 : f32
    %337 = vector.broadcast %cst_115 : f32 to vector<8x128xf32>
    %338 = arith.select %336, %337, %310 : vector<8x128xi1>, vector<8x128xf32>
    %cst_116 = arith.constant 1.000000e+00 : f32
    %339 = vector.broadcast %cst_116 : f32 to vector<8x128xf32>
    %340 = arith.subf %339, %288 : vector<8x128xf32>
    %cst_117 = arith.constant 1.000000e+00 : f32
    %341 = vector.broadcast %cst_117 : f32 to vector<8x128xf32>
    %342 = arith.cmpf oeq, %340, %341 : vector<8x128xf32>
    %cst_118 = arith.constant 1.000000e+00 : f32
    %343 = vector.broadcast %cst_118 : f32 to vector<8x128xf32>
    %344 = arith.select %342, %343, %320 : vector<8x128xi1>, vector<8x128xf32>
    %cst_119 = arith.constant 0.000000e+00 : f32
    %345 = vector.broadcast %cst_119 : f32 to vector<8x128xf32>
    %346 = math.log %326 : vector<8x128xf32>
    %347 = arith.addf %345, %346 : vector<8x128xf32>
    %348 = tpu.reciprocal %326 {approx = true} : vector<8x128xf32> -> vector<8x128xf32>
    %349 = arith.mulf %326, %348 : vector<8x128xf32>
    %cst_120 = arith.constant 2.000000e+00 : f32
    %350 = vector.broadcast %cst_120 : f32 to vector<8x128xf32>
    %351 = arith.subf %350, %349 : vector<8x128xf32>
    %352 = arith.mulf %348, %351 : vector<8x128xf32>
    %353 = arith.mulf %298, %352 : vector<8x128xf32>
    %354 = arith.mulf %353, %292 : vector<8x128xf32>
    %355 = arith.subf %332, %354 : vector<8x128xf32>
    %356 = arith.mulf %353, %294 : vector<8x128xf32>
    %357 = arith.subf %302, %356 : vector<8x128xf32>
    %358 = arith.mulf %353, %296 : vector<8x128xf32>
    %359 = arith.subf %304, %358 : vector<8x128xf32>
    %360 = arith.mulf %306, %352 : vector<8x128xf32>
    %361 = arith.mulf %360, %292 : vector<8x128xf32>
    %362 = arith.subf %308, %361 : vector<8x128xf32>
    %363 = arith.mulf %360, %294 : vector<8x128xf32>
    %364 = arith.subf %338, %363 : vector<8x128xf32>
    %365 = arith.mulf %360, %296 : vector<8x128xf32>
    %366 = arith.subf %312, %365 : vector<8x128xf32>
    %367 = arith.mulf %314, %352 : vector<8x128xf32>
    %368 = arith.mulf %367, %292 : vector<8x128xf32>
    %369 = arith.subf %316, %368 : vector<8x128xf32>
    %370 = arith.mulf %367, %294 : vector<8x128xf32>
    %371 = arith.subf %318, %370 : vector<8x128xf32>
    %372 = arith.mulf %367, %296 : vector<8x128xf32>
    %373 = arith.subf %344, %372 : vector<8x128xf32>
    %374 = math.log %355 : vector<8x128xf32>
    %375 = arith.addf %347, %374 : vector<8x128xf32>
    %376 = tpu.reciprocal %355 {approx = true} : vector<8x128xf32> -> vector<8x128xf32>
    %377 = arith.mulf %355, %376 : vector<8x128xf32>
    %cst_121 = arith.constant 2.000000e+00 : f32
    %378 = vector.broadcast %cst_121 : f32 to vector<8x128xf32>
    %379 = arith.subf %378, %377 : vector<8x128xf32>
    %380 = arith.mulf %376, %379 : vector<8x128xf32>
    %381 = arith.mulf %362, %380 : vector<8x128xf32>
    %382 = arith.mulf %381, %357 : vector<8x128xf32>
    %383 = arith.subf %364, %382 : vector<8x128xf32>
    %384 = arith.mulf %381, %359 : vector<8x128xf32>
    %385 = arith.subf %366, %384 : vector<8x128xf32>
    %386 = arith.mulf %369, %380 : vector<8x128xf32>
    %387 = arith.mulf %386, %357 : vector<8x128xf32>
    %388 = arith.subf %371, %387 : vector<8x128xf32>
    %389 = arith.mulf %386, %359 : vector<8x128xf32>
    %390 = arith.subf %373, %389 : vector<8x128xf32>
    %391 = math.log %383 : vector<8x128xf32>
    %392 = arith.addf %375, %391 : vector<8x128xf32>
    %393 = tpu.reciprocal %383 {approx = true} : vector<8x128xf32> -> vector<8x128xf32>
    %394 = arith.mulf %383, %393 : vector<8x128xf32>
    %cst_122 = arith.constant 2.000000e+00 : f32
    %395 = vector.broadcast %cst_122 : f32 to vector<8x128xf32>
    %396 = arith.subf %395, %394 : vector<8x128xf32>
    %397 = arith.mulf %393, %396 : vector<8x128xf32>
    %398 = arith.mulf %388, %397 : vector<8x128xf32>
    %399 = arith.mulf %398, %385 : vector<8x128xf32>
    %400 = arith.subf %390, %399 : vector<8x128xf32>
    %401 = math.log %400 : vector<8x128xf32>
    %402 = arith.addf %392, %401 : vector<8x128xf32>
    %403 = vector.broadcast %0 : f32 to vector<8x128xf32>
    %404 = arith.subf %402, %403 : vector<8x128xf32>
    %405 = arith.index_cast %222 : i32 to index
    %c0_123 = arith.constant 0 : index
    %406 = vector.load %arg5[%405, %c0_123] : memref<16x128xf32, #tpu.memory_space<vmem>>, vector<8x128xf32>
    tpu.vector_store %arg5[%405, %c0_123], %404 {strides = array<i32>} : memref<16x128xf32, #tpu.memory_space<vmem>>, vector<8x128xf32>,
    %c2_i32_124 = arith.constant 2 : i32
    return
  }
  func.func @transform_0(%arg0: i32) -> (i32, i32) {
    %c0_i32 = arith.constant 0 : i32
    %c0_i32_0 = arith.constant 0 : i32
    return %arg0, %c0_i32 : i32, i32
  }
  func.func @transform_1(%arg0: i32) -> (i32, i32) {
    %c0_i32 = arith.constant 0 : i32
    %c0_i32_0 = arith.constant 0 : i32
    %c0_i32_1 = arith.constant 0 : i32
    return %c0_i32, %c0_i32_0 : i32, i32
  }
  func.func @transform_2(%arg0: i32) -> (i32, i32) {
    %c0_i32 = arith.constant 0 : i32
    %c0_i32_0 = arith.constant 0 : i32
    %c0_i32_1 = arith.constant 0 : i32
    return %c0_i32, %c0_i32_0 : i32, i32
  }
  func.func @transform_3(%arg0: i32) -> (i32, i32) {
    %c0_i32 = arith.constant 0 : i32
    %c0_i32_0 = arith.constant 0 : i32
    %c0_i32_1 = arith.constant 0 : i32
    return %c0_i32, %c0_i32_0 : i32, i32
  }
  func.func @transform_4(%arg0: i32) -> (i32, i32) {
    %c0_i32 = arith.constant 0 : i32
    %c0_i32_0 = arith.constant 0 : i32
    return %arg0, %c0_i32 : i32, i32
  }
}

</mosaic_0001>

<bundles_post_ra>
// kernel: tpu_custom_call.1
= control target key start
LH: loop header
LB: loop body
LE: loop exit
PB: predicated region body
PF: predicated region fallthrough
CT: control target
= control target key end

     0   :  { %10 = vsyncpa [#allocation4], 0  ;;  %s976_s0 = inlined_call_operand.hbm [shape: s32[16,128], index: 0, kind: input, shape index: {}]   ;;  %s977_s1 = inlined_call_operand.vmem [shape: f32[8,4], index: 1, kind: input, shape index: {}]   ;;  %s978_s2 = inlined_call_operand.vmem [shape: f32[4,4], index: 2, kind: input, shape index: {}]   ;;  %s979_s3 = inlined_call_operand.<no memory space> [shape: f32[1,1], index: 3, kind: input, shape index: {}]   ;;  %s980_s4 = inlined_call_operand.hbm [shape: f32[16,128], index: 4, kind: output, shape index: {}]  }
   0x1   :  { %11 = vsyncpa [#allocation6], 0 }
   0x2   :  { %12 = vsyncpa [#allocation9], 0 }
   0x3   :  { %13 = vsyncpa [#allocation5], 0  ;;  %s529_s15 = smov [#allocation3]   ;;  %s32_s19 = sshll.u32 %s977_s1, 4  ;;  %s33_s19 = int_to_ptr.vmem [resolvable:$true] %s32_s19 }
   0x4   :  { %s19_s16 = sshll.u32 %s529_s15, 4  ;;  %s453_s22 = scalar_lea.hbm %s976_s0, 256  ;;  %s20_s16 = int_to_ptr.vmem [resolvable:$true] %s19_s16 }
   0x5   :  { %p454_p0 = scmp.ne.s32.totalorder %s976_s0, %s453_s22  ;;  %p457_p1 = scmp.lt.u32.totalorder %s453_s22, %s976_s0 }
   0x7   :  { %p459_p2 = pnand %p457_p1, %p454_p0 }
   0x9   :  { %462 = shalt.err (!%p459_p2)
}
   0xa   :  { %s463_s27 = scalar_lea.vmem %s20_s16, 256  ;;  %p468_p4 = scmp.lt.s32.totalorder %s20_s16, %s20_s16 }
   0xb   :  { %p464_p3 = scmp.ne.s32.totalorder %s20_s16, %s463_s27  ;;  %p469_p5 = scmp.lt.s32.totalorder %s463_s27, %s463_s27 }
   0xd   :  { %p470_p6 = por %p469_p5, %p468_p4 }
   0xf   :  { %p471_p7 = pnand %p470_p6, %p464_p3 }
  0x11   :  { %474 = shalt.err (!%p471_p7)
}
  0x12   :  { %s530_s1 = smov 128   ;;  %s531_s28 = smov 8  }
  0x13   :  { %25 = dma.hbm_to_vmem [thread:$0]  %s976_s0, 256, %s20_s16, [#allocation4], %s530_s1, %s530_s1, %s531_s28  }
  0x14   :  { %s475_s5 = scalar_lea.vmem %s33_s19, 128  ;;  %p480_p9 = scmp.lt.s32.totalorder %s33_s19, %s33_s19 }
  0x15   :  { %p476_p8 = scmp.ne.s32.totalorder %s33_s19, %s475_s5  ;;  %p481_p10 = scmp.lt.s32.totalorder %s475_s5, %s475_s5 }
  0x17   :  { %p482_p11 = por %p481_p10, %p480_p9 }
  0x19   :  { %p483_p12 = pnand %p482_p11, %p476_p8 }
  0x1b   :  { %486 = shalt.err (!%p483_p12)
}
  0x1c   :  { %s532_s6 = smov [#allocation7]   ;;  %s42_s9 = sshll.u32 %s978_s2, 4  ;;  %s43_s9 = int_to_ptr.vmem [resolvable:$true] %s42_s9 }
  0x1d   :  { %35 = dma.vmem_to_smem %s33_s19, 128, %s532_s6, [#allocation6]  }
  0x1e   :  { %s487_s10 = scalar_lea.vmem %s43_s9, 64  ;;  %p492_p0 = scmp.lt.s32.totalorder %s43_s9, %s43_s9 }
  0x1f   :  { %p488_p13 = scmp.ne.s32.totalorder %s43_s9, %s487_s10  ;;  %p493_p1 = scmp.lt.s32.totalorder %s487_s10, %s487_s10 }
  0x21   :  { %p494_p2 = por %p493_p1, %p492_p0 }
  0x23   :  { %p495_p3 = pnand %p494_p2, %p488_p13 }
  0x25   :  { %498 = shalt.err (!%p495_p3)
}
  0x26   :  { %s533_s0 = smov [#allocation8]  }
  0x27   :  { %45 = dma.vmem_to_smem %s43_s9, 64, %s533_s0, [#allocation9]  }
  0x28   :  { %521 = dma.done.wait [#allocation4], 256  }
  0x29   :  { %522 = vsyncadd [#allocation4], 4294967040 }
  0x2a   :  { %523 = dma.done.wait [#allocation6], 128  }
  0x2b   :  { %524 = vsyncadd [#allocation6], 4294967168 }
  0x2c   :  { %525 = dma.done.wait [#allocation9], 64  }
  0x2d   :  { %526 = vsyncadd [#allocation9], 4294967232 }
  0x2e   :  { %57 = sfence }
  0x2f   :  { %s581_s11 = sld [smem:[#allocation7]]  ;;  %v589_v0 = vld [vmem:[#allocation3] sm:$0xff]  ;;  %v599_v7 = vld [vmem:[#allocation3 + $0x8] sm:$0xff]  ;;  %s601_s15 = sld [smem:[#allocation7 + $0x1]] }
  0x30   :  { %s583_s2 = sld [smem:[#allocation7 + $0x80]]  ;;  %v94_v1 = vand.u32 1, %v589_v0  ;;  %v96_v2 = vand.u32 2, %v589_v0  ;;  %s603_s16 = sld [smem:[#allocation7 + $0x81]]  ;;  %v249_v10 = vand.u32 1, %v599_v7  ;;  %v105_v13 = vand.u32 4, %v589_v0 }
  0x31   :  { %s585_s12 = sld [smem:[#allocation7 + $0x100]]  ;;  %s605_s17 = sld [smem:[#allocation7 + $0x101]]  ;;  %v251_v14 = vand.u32 2, %v599_v7  ;;  %v107_v18 = vand.u32 8, %v589_v0  ;;  %v109_v32 = vand.u32 16, %v589_v0  ;;  %v256_v42 = vand.u32 4, %v599_v7 }
  0x32   :  { %s587_s13 = sld [smem:[#allocation7 + $0x180]]  ;;  %vm95_vm0 = vcmp.ne.s32.totalorder %v94_v1, 0  ;;  %vm97_vm1 = vcmp.ne.s32.totalorder %v96_v2, 0  ;;  %s607_s18 = sld [smem:[#allocation7 + $0x181]]  ;;  %vm250_vm2 = vcmp.ne.s32.totalorder %v249_v10, 0  ;;  %vm625_vm3 = vcmp.ne.s32.totalorder %v105_v13, 0 }
  0x33   :  { %s592_s14 = sld [smem:[#allocation8]]  ;;  %s609_s19 = sld [smem:[#allocation7 + $0x201]]  ;;  %vm630_vm4 = vcmp.ne.s32.totalorder %v251_v14, 0  ;;  %vm645_vm6 = vcmp.ne.s32.totalorder %v107_v18, 0  ;;  %vm110_vm7 = vcmp.ne.s32.totalorder %v109_v32, 0  ;;  %v258_v44 = vand.u32 8, %v599_v7 }
  0x34   :  { %s611_s20 = sld [smem:[#allocation7 + $0x281]]  ;;  %s652_s23 = sld [smem:[#allocation8 + $0x80]]  ;;  %vm257_vm9 = vcmp.ne.s32.totalorder %v256_v42, 0  ;;  %v260_v56 = vand.u32 16, %v599_v7  ;;  %v274_v52 = vand.u32 128, %v599_v7 }
  0x35   :  { %v99_v4 = vstv %s581_s11  ;;  %s614_s21 = sld [smem:[#allocation7 + $0x301]]  ;;  %v112_v21 = vstv %s601_s15  ;;  %vm686_vm10 = vcmp.ne.s32.totalorder %v258_v44, 0  ;;  %s693_s26 = sld [smem:[#allocation8 + $0x100]] }
  0x36   :  { %v98_v3 = vstv %s583_s2  ;;  %s616_s22 = sld [smem:[#allocation7 + $0x381]]  ;;  %v111_v20 = vstv %s603_s16  ;;  %s700_s27 = sld [smem:[#allocation7 + $0x82]]  ;;  %vm261_vm12 = vcmp.ne.s32.totalorder %v260_v56, 0 }
  0x37   :  { %v102_v6 = vstv %s585_s12  ;;  %v100_v8 = vsel %vm95_vm0, %v98_v3, %v99_v4  ;;  %v253_v22 = vsel %vm250_vm2, %v98_v3, %v99_v4  ;;  %v115_v24 = vstv %s605_s17  ;;  %s654_s24 = sld [smem:[#allocation8 + $0x81]]  ;;  %s702_s29 = sld [smem:[#allocation7 + $0x2]] }
  0x38   :  { %v101_v5 = vstv %s587_s13  ;;  %v114_v23 = vstv %s607_s18  ;;  %v113_v33 = vsel %vm625_vm3, %v111_v20, %v112_v21  ;;  %s666_s25 = sld [smem:[#allocation8 + $0x1]]  ;;  %v262_v57 = vsel %vm257_vm9, %v111_v20, %v112_v21  ;;  %s713_s30 = sld [smem:[#allocation8 + $0x2]] }
  0x39   :  { %v103_v9 = vsel %vm95_vm0, %v101_v5, %v102_v6  ;;  %v142_v12 = vstv %s592_s14  ;;  %v254_v26 = vsel %vm250_vm2, %v101_v5, %v102_v6  ;;  %v119_v28 = vstv %s609_s19  ;;  %s720_s5 = sld [smem:[#allocation8 + $0x101]]  ;;  %s723_s6 = sld [smem:[#allocation8 + $0x102]] }
  0x3a   :  { %v618_v11 = vsel %vm97_vm1, %v103_v9, %v100_v8  ;;  %v118_v27 = vstv %s611_s20  ;;  %v116_v34 = vsel %vm625_vm3, %v114_v23, %v115_v24  ;;  %v664_v37 = vsel %vm630_vm4, %v254_v26, %v253_v22  ;;  %s727_s7 = sld [smem:[#allocation8 + $0x82]]  ;;  %s735_s8 = sld [smem:[#allocation8 + $0x180]] }
  0x3b   :  { %v143_v15 = vmul.f32 %v142_v12, %v618_v11  ;;  %v174_v16 = vsub.f32 1.0, %v618_v11  ;;  %v122_v30 = vstv %s614_s21  ;;  %v120_v35 = vsel %vm625_vm3, %v118_v27, %v119_v28  ;;  %s737_s9 = sld [smem:[#allocation7 + $0x3]]  ;;  %s782_s2 = sld [smem:[#allocation8 + $0x181]] }
  0x3c   :  { %v121_v29 = vstv %s616_s22  ;;  %v117_v38 = vsel %vm645_vm6, %v116_v34, %v113_v33  ;;  %v279_v40 = vmul.f32 %v664_v37, %v142_v12  ;;  %v295_v41 = vsub.f32 1.0, %v664_v37  ;;  %s742_s10 = sld [smem:[#allocation7 + $0x83]]  ;;  %s817_s15 = sld [smem:[#allocation8 + $0x182]] }
  0x3d   :  { %vm175_vm5 = vcmp.eq.f32.partialorder %v174_v16, 1.0  ;;  %v123_v36 = vsel %vm625_vm3, %v121_v29, %v122_v30  ;;  %v150_v47 = vstv %s652_s23  ;;  %v152_v48 = vstv %s654_s24  ;;  %s744_s0 = sld [smem:[#allocation7 + $0x183]]  ;;  %s534_s19 = smov [#allocation10]  }
  0x3e   :  { %v638_v25 = vsel %vm175_vm5, 1.0, %v143_v15  ;;  %v124_v39 = vsel %vm645_vm6, %v123_v36, %v120_v35  ;;  %vm296_vm8 = vcmp.eq.f32.partialorder %v295_v41, 1.0  ;;  %v144_v51 = vstv %s666_s25  ;;  %s756_s11 = sld [smem:[#allocation7 + $0x103]]  ;;  %s373_s20 = sshll.u32 %s534_s19, 4  ;;  %s374_s20 = int_to_ptr.vmem [resolvable:$true] %s373_s20 }
  0x3f   :  { %425 = vrcp.f32 %v638_v25  ;;  %v675_v43 = vsel %vm110_vm7, %v124_v39, %v117_v38  ;;  %v678_v45 = vsel %vm296_vm8, 1.0, %v279_v40  ;;  %v151_v53 = vmul.f32 %v150_v47, %v618_v11  ;;  %s797_s12 = sld [smem:[#allocation8 + $0x3]]  ;;  %s499_s21 = scalar_lea.vmem %s374_s20, 256 }
  0x40   :  { %v177_v49 = vsub.f32 1.0, %v675_v43  ;;  %427 = vrcp.f32 %v678_v45  ;;  %v153_v54 = vmul.f32 %v152_v48, %v675_v43  ;;  %v263_v58 = vsel %vm257_vm9, %v114_v23, %v115_v24  ;;  %s799_s13 = sld [smem:[#allocation8 + $0x83]]  ;;  %p500_p4 = scmp.ne.s32.totalorder %s374_s20, %s499_s21 }
  0x41   :  { %v265_v59 = vsel %vm257_vm9, %v118_v27, %v119_v28  ;;  %v266_v60 = vsel %vm257_vm9, %v121_v29, %v122_v30  ;;  %v696_v61 = vmul.f32 %v144_v51, %v675_v43  ;;  %v264_v1 = vsel %vm686_vm10, %v263_v58, %v262_v57  ;;  %s815_s14 = sld [smem:[#allocation8 + $0x103]]  ;;  %p504_p5 = scmp.lt.s32.totalorder %s374_s20, %s374_s20 }
  0x42   :  { %vm178_vm11 = vcmp.eq.f32.partialorder %v177_v49, 1.0  ;;  %v267_v2 = vsel %vm686_vm10, %v266_v60, %v265_v59  ;;  %v126_v5 = vand.u32 32, %v589_v0  ;;  %v158_v10 = vstv %s693_s26  ;;  %s827_s16 = sld [smem:[#allocation8 + $0x183]]  ;;  %p505_p6 = scmp.lt.s32.totalorder %s499_s21, %s499_s21 }
  0x43   :  { %v179_v3 = vsel %vm178_vm11, 1.0, %v153_v54  ;;  %v716_v6 = vsel %vm261_vm12, %v267_v2, %v264_v1  ;;  %v128_v15 = vstv %s700_s27  ;;  %v129_v16 = vstv %s702_s29 }
  0x44   :  { %v298_v12 = vsub.f32 1.0, %v716_v6  ;;  %vm729_vm13 = vcmp.ne.s32.totalorder %v126_v5, 0  ;;  %v159_v17 = vmul.f32 %v158_v10, %v618_v11  ;;  %v283_v18 = vmul.f32 %v664_v37, %v150_v47  ;;  %p506_p7 = por %p505_p6, %p504_p5 }
  0x45   :  { %v284_v20 = vmul.f32 %v716_v6, %v152_v48  ;;  %v748_v21 = vmul.f32 %v716_v6, %v144_v51  ;;  %v762_v24 = vsel %vm729_vm13, %v128_v15, %v129_v16  ;;  %v131_v26 = vand.u32 64, %v589_v0 }
  0x46   :  { %vm750_vm14 = vcmp.eq.f32.partialorder %v298_v12, 1.0  ;;  %v146_v27 = vstv %s713_s30  ;;  %v160_v30 = vstv %s720_s5  ;;  %v162_v33 = vstv %s723_s6  ;;  %p507_p8 = pnand %p506_p7, %p500_p4 }
  0x47   :  { %v300_v31 = vsel %vm750_vm14, 1.0, %v284_v20  ;;  %v776_v32 = vmul.f32 %v146_v27, %v762_v24  ;;  %v180_v34 = vsub.f32 1.0, %v762_v24  ;;  %vm784_vm15 = vcmp.ne.s32.totalorder %v131_v26, 0 }
  0x48   :  { %v133_v38 = vand.u32 128, %v589_v0  ;;  %v154_v39 = vstv %s727_s7  ;;  %v269_v40 = vand.u32 32, %v599_v7  ;;  %v161_v41 = vmul.f32 %v160_v30, %v675_v43 }
  0x49   :  { %v426_v46 = vpop.eup %425  ;;  %v166_v42 = vstv %s735_s8  ;;  %v135_v48 = vstv %s742_s10  ;;  %v136_v0 = vstv %s737_s9  ;;  %v138_v49 = vstv %s744_s0 }
  0x4a   :  { %v190_v50 = vmul.f32 %v426_v46, %v638_v25  ;;  %v428_v8 = vpop.eup %427  ;;  %v155_v51 = vmul.f32 %v154_v39, %v762_v24  ;;  %vm808_vm0 = vcmp.eq.f32.partialorder %v180_v34, 1.0  ;;  %v167_v56 = vmul.f32 %v166_v42, %v618_v11 }
  0x4b   :  { %v311_v13 = vmul.f32 %v428_v8, %v678_v45  ;;  %vm270_vm1 = vcmp.ne.s32.totalorder %v269_v40, 0  ;;  %v287_v60 = vmul.f32 %v664_v37, %v158_v10  ;;  %vm134_vm2 = vcmp.ne.s32.totalorder %v133_v38, 0 }
  0x4c   :  { %v191_v55 = vsub.f32 2.0, %v190_v50  ;;  %v163_v50 = vmul.f32 %v162_v33, %v762_v24  ;;  %v168_v5 = vstv %s782_s2  ;;  %v170_v26 = vstv %s817_s15 }
  0x4d   :  { %v312_v19 = vsub.f32 2.0, %v311_v13  ;;  %v288_v36 = vmul.f32 %v716_v6, %v160_v30  ;;  %vm275_vm6 = vcmp.ne.s32.totalorder %v274_v52, 0 }
  0x4e   :  { %v698_v62 = vmul.f32 %v426_v46, %v191_v55  ;;  %v139_v55 = vstv %s756_s11  ;;  %v182_v1 = vsel %vm808_vm0, 1.0, %v163_v50 }
  0x4f   :  { %v754_v23 = vmul.f32 %v428_v8, %v312_v19  ;;  %v848_v8 = vsel %vm270_vm1, %v128_v15, %v129_v16  ;;  %v164_v16 = vstv %s815_s14 }
  0x50   :  { %v705_v63 = vmul.f32 %v698_v62, %v151_v53  ;;  %v767_v28 = vmul.f32 %v698_v62, %v159_v17  ;;  %v207_v12 = vmul.f32 %v698_v62, %v167_v56  ;;  %v148_v17 = vstv %s797_s12 }
  0x51   :  { %v770_v29 = vmul.f32 %v754_v23, %v283_v18  ;;  %v854_v14 = vmul.f32 %v754_v23, %v287_v60  ;;  %v156_v18 = vstv %s799_s13  ;;  %v861_v22 = vmul.f32 %v848_v8, %v146_v27 }
  0x52   :  { %v194_v4 = vmul.f32 %v705_v63, %v696_v61  ;;  %v201_v44 = vmul.f32 %v767_v28, %v696_v61  ;;  %v196_v53 = vmul.f32 %v705_v63, %v776_v32  ;;  %v203_v58 = vmul.f32 %v767_v28, %v776_v32 }
  0x53   :  { %v315_v35 = vmul.f32 %v770_v29, %v748_v21  ;;  %v301_v15 = vsub.f32 1.0, %v848_v8  ;;  %v169_v62 = vmul.f32 %v168_v5, %v675_v43  ;;  %v208_v34 = vmul.f32 %v207_v12, %v696_v61 }
  0x54   :  { %v718_v9 = vsub.f32 %v179_v3, %v194_v4  ;;  %v202_v57 = vsub.f32 %v161_v41, %v201_v44  ;;  %v831_v2 = vsub.f32 %v155_v51, %v196_v53  ;;  %v137_v3 = vsel %vm784_vm15, %v135_v48, %v136_v0 }
  0x55   :  { %v795_v46 = vsub.f32 %v300_v31, %v315_v35  ;;  %v140_v4 = vsel %vm784_vm15, %v138_v49, %v139_v55  ;;  %v204_v10 = vsub.f32 %v182_v1, %v203_v58  ;;  %v272_v31 = vand.u32 64, %v599_v7 }
  0x56   :  { %429 = vrcp.f32 %v718_v9  ;;  %v141_v19 = vsel %vm134_vm2, %v140_v4, %v137_v3  ;;  %v322_v38 = vmul.f32 %v854_v14, %v748_v21  ;;  %v172_v41 = vstv %s827_s16 }
  0x57   :  { %431 = vrcp.f32 %v795_v46  ;;  %v149_v40 = vmul.f32 %v148_v17, %v141_v19  ;;  %v183_v44 = vsub.f32 1.0, %v141_v19  ;;  %v289_v43 = vmul.f32 %v848_v8, %v162_v33 }
  0x58   :  { %v285_v61 = vmul.f32 %v848_v8, %v154_v39  ;;  %vm879_vm3 = vcmp.eq.f32.partialorder %v301_v15, 1.0  ;;  %v317_v30 = vmul.f32 %v770_v29, %v861_v22  ;;  %vm887_vm4 = vcmp.ne.s32.totalorder %v272_v31, 0 }
  0x59   :  { %v291_v33 = vmul.f32 %v664_v37, %v166_v42  ;;  %v209_v39 = vsub.f32 %v169_v62, %v208_v34  ;;  %v323_v53 = vsub.f32 %v288_v36, %v322_v38  ;;  %v171_v58 = vmul.f32 %v170_v26, %v762_v24 }
  0x5a   :  { %v173_v7 = vmul.f32 %v172_v41, %v141_v19  ;;  %vm906_vm5 = vcmp.eq.f32.partialorder %v183_v44, 1.0  ;;  %v198_v42 = vmul.f32 %v705_v63, %v149_v40  ;;  %v318_v60 = vsub.f32 %v285_v61, %v317_v30 }
  0x5b   :  { %v210_v3 = vmul.f32 %v207_v12, %v776_v32  ;;  %v276_v24 = vsel %vm887_vm4, %v135_v48, %v136_v0  ;;  %v277_v4 = vsel %vm887_vm4, %v138_v49, %v139_v55  ;;  %v328_v15 = vmul.f32 %v754_v23, %v291_v33 }
  0x5c   :  { %v165_v62 = vmul.f32 %v164_v16, %v141_v19  ;;  %v205_v32 = vmul.f32 %v767_v28, %v149_v40  ;;  %v278_v34 = vsel %vm275_vm6, %v277_v4, %v276_v24  ;;  %v185_v48 = vsel %vm906_vm5, 1.0, %v173_v7 }
  0x5d   :  { %v212_v0 = vmul.f32 %v207_v12, %v149_v40  ;;  %v292_v38 = vmul.f32 %v716_v6, %v168_v5  ;;  %v329_v23 = vmul.f32 %v328_v15, %v748_v21  ;;  %v290_v52 = vmul.f32 %v278_v34, %v164_v16 }
  0x5e   :  { %v206_v28 = vsub.f32 %v165_v62, %v205_v32  ;;  %v294_v33 = vmul.f32 %v278_v34, %v172_v41 }
  0x5f   :  { %v213_v6 = vsub.f32 %v185_v48, %v212_v0  ;;  %v330_v40 = vsub.f32 %v292_v38, %v329_v23  ;;  %v244_v48 = vstv %s979_s3 }
  0x60   :  { %v430_v47 = vpop.eup %429 }
  0x61   :  { %v218_v54 = vmul.f32 %v430_v47, %v718_v9  ;;  %v432_v27 = vpop.eup %431 }
  0x62   :  { %v339_v50 = vmul.f32 %v432_v27, %v795_v46 }
  0x63   :  { %v219_v59 = vsub.f32 2.0, %v218_v54  ;;  %v324_v54 = vmul.f32 %v854_v14, %v861_v22 }
  0x64   :  { %v340_v56 = vsub.f32 2.0, %v339_v50  ;;  %v331_v50 = vmul.f32 %v328_v15, %v861_v22 }
  0x65   :  { %v220_v11 = vmul.f32 %v430_v47, %v219_v59  ;;  %v303_v59 = vsel %vm879_vm3, 1.0, %v289_v43  ;;  %v286_v43 = vmul.f32 %v278_v34, %v156_v18 }
  0x66   :  { %v341_v1 = vmul.f32 %v432_v27, %v340_v56  ;;  %v211_v27 = vsub.f32 %v171_v58, %v210_v3 }
  0x67   :  { %v851_v13 = vmul.f32 %v220_v11, %v202_v57  ;;  %v157_v57 = vmul.f32 %v156_v18, %v141_v19  ;;  %v282_v19 = vmul.f32 %v278_v34, %v148_v17 }
  0x68   :  { %v342_v63 = vmul.f32 %v341_v1, %v323_v53  ;;  %v347_v51 = vmul.f32 %v341_v1, %v330_v40 }
  0x69   :  { %v222_v20 = vmul.f32 %v851_v13, %v831_v2  ;;  %v199_v31 = vsub.f32 %v157_v57, %v198_v42  ;;  %v333_v22 = vmul.f32 %v328_v15, %v282_v19 }
  0x6a   :  { %v343_v36 = vmul.f32 %v342_v63, %v318_v60  ;;  %v348_v56 = vmul.f32 %v347_v51, %v318_v60 }
  0x6b   :  { %v869_v35 = vsub.f32 %v204_v10, %v222_v20  ;;  %v226_v10 = vmul.f32 %v220_v11, %v209_v39  ;;  %v325_v20 = vsub.f32 %v303_v59, %v324_v54  ;;  %v224_v44 = vmul.f32 %v851_v13, %v199_v31 }
  0x6c   :  { %v293_v13 = vmul.f32 %v848_v8, %v170_v26 }
  0x6d   :  { %433 = vrcp.f32 %v869_v35  ;;  %v227_v49 = vmul.f32 %v226_v10, %v831_v2  ;;  %v344_v55 = vsub.f32 %v325_v20, %v343_v36  ;;  %v229_v5 = vmul.f32 %v226_v10, %v199_v31 }
  0x6e   :  { %435 = vlog2.f32 %v638_v25  ;;  %v304_v25 = vsub.f32 1.0, %v278_v34  ;;  %v225_v17 = vsub.f32 %v206_v28, %v224_v44  ;;  %v332_v54 = vsub.f32 %v293_v13, %v331_v50 }
  0x6f   :  { %437 = vlog2.f32 %v718_v9  ;;  %v228_v2 = vsub.f32 %v211_v27, %v227_v49  ;;  %v319_v9 = vmul.f32 %v770_v29, %v282_v19  ;;  %v230_v47 = vsub.f32 %v213_v6, %v229_v5 }
  0x70   :  { %439 = vrcp.f32 %v344_v55  ;;  %vm949_vm7 = vcmp.eq.f32.partialorder %v304_v25, 1.0  ;;  %v326_v29 = vmul.f32 %v854_v14, %v282_v19 }
  0x71   :  { %441 = vlog2.f32 %v869_v35  ;;  %v306_v16 = vsel %vm949_vm7, 1.0, %v294_v33 }
  0x72   :  { %443 = vlog2.f32 %v678_v45  ;;  %v327_v41 = vsub.f32 %v290_v52, %v326_v29  ;;  %v334_v42 = vsub.f32 %v306_v16, %v333_v22  ;;  %v349_v45 = vsub.f32 %v332_v54, %v348_v56 }
  0x73   :  { %445 = vlog2.f32 %v795_v46 }
  0x77   :  { %v434_v11 = vpop.eup %433 }
  0x78   :  { %v235_v12 = vmul.f32 %v434_v11, %v869_v35  ;;  %v320_v35 = vsub.f32 %v286_v43, %v319_v9  ;;  %v436_v53 = vpop.eup %435 }
  0x79   :  { %v438_v8 = vpop.eup %437  ;;  %v187_v59 = vmul.f32 0.6931472, %v436_v53 }
  0x7a   :  { %v236_v21 = vsub.f32 2.0, %v235_v12  ;;  %v440_v57 = vpop.eup %439  ;;  %v345_v58 = vmul.f32 %v342_v63, %v320_v35  ;;  %v215_v14 = vmul.f32 0.6931472, %v438_v8  ;;  %v350_v1 = vmul.f32 %v347_v51, %v320_v35 }
  0x7b   :  { %v356_v7 = vmul.f32 %v440_v57, %v344_v55  ;;  %v442_v37 = vpop.eup %441 }
  0x7c   :  { %v237_v61 = vmul.f32 %v434_v11, %v236_v21  ;;  %v346_v24 = vsub.f32 %v327_v41, %v345_v58  ;;  %v216_v4 = vadd.f32 %v215_v14, %v187_v59  ;;  %v232_v10 = vmul.f32 0.6931472, %v442_v37  ;;  %v444_v62 = vpop.eup %443 }
  0x7d   :  { %v357_v3 = vsub.f32 2.0, %v356_v7  ;;  %v351_v20 = vsub.f32 %v334_v42, %v350_v1  ;;  %v446_v31 = vpop.eup %445  ;;  %v308_v38 = vmul.f32 0.6931472, %v444_v62 }
  0x7e   :  { %v238_v30 = vmul.f32 %v237_v61, %v228_v2  ;;  %v233_v32 = vadd.f32 %v232_v10, %v216_v4  ;;  %v336_v27 = vmul.f32 0.6931472, %v446_v31 }
  0x7f   :  { %v358_v60 = vmul.f32 %v440_v57, %v357_v3 }
  0x80   :  { %v239_v18 = vmul.f32 %v238_v30, %v225_v17 }
  0x81   :  { %v359_v15 = vmul.f32 %v358_v60, %v349_v45 }
  0x82   :  { %v240_v26 = vsub.f32 %v230_v47, %v239_v18 }
  0x83   :  { %v360_v46 = vmul.f32 %v359_v15, %v346_v24 }
  0x84   :  { %447 = vlog2.f32 %v240_v26 }
  0x85   :  { %449 = vlog2.f32 %v344_v55  ;;  %v361_v34 = vsub.f32 %v351_v20, %v360_v46  ;;  %v337_v55 = vadd.f32 %v336_v27, %v308_v38 }
  0x87   :  { %451 = vlog2.f32 %v361_v34 }
  0x8e   :  { %v448_v63 = vpop.eup %447 }
  0x8f   :  { %v242_v36 = vmul.f32 0.6931472, %v448_v63  ;;  %v450_v49 = vpop.eup %449 }
  0x90   :  { %v353_v11 = vmul.f32 0.6931472, %v450_v49 }
  0x91   :  { %v243_v0 = vadd.f32 %v242_v36, %v233_v32  ;;  %v452_v28 = vpop.eup %451 }
  0x92   :  { %v354_v19 = vadd.f32 %v353_v11, %v337_v55  ;;  %v363_v44 = vmul.f32 0.6931472, %v452_v28 }
  0x93   :  { %v245_v23 = vsub.f32 %v243_v0, %v244_v48 }
  0x94   :  { %v364_v12 = vadd.f32 %v363_v44, %v354_v19 }
  0x95   :  { %246 = vst [vmem:[#allocation10] sm:$0xff] %v245_v23 }
  0x96   :  { %v365_v6 = vsub.f32 %v364_v12, %v244_v48 }
  0x98   :  { %367 = vst [vmem:[#allocation10 + $0x8] sm:$0xff] %v365_v6 }
  0x99   :  { %510 = shalt.err (!%p507_p8)
}
  0x9a   :  { %s511_s23 = scalar_lea.hbm %s980_s4, 256 }
  0x9b   :  { %p512_p9 = scmp.ne.s32.totalorder %s980_s4, %s511_s23  ;;  %p515_p10 = scmp.lt.u32.totalorder %s511_s23, %s980_s4 }
  0x9d   :  { %p517_p11 = pnand %p515_p10, %p512_p9 }
  0x9f   :  { %520 = shalt.err (!%p517_p11)
}
  0xa0   :  { %379 = dma.vmem_to_hbm [thread:$0]  %s374_s20, 256, %s980_s4, [#allocation5], %s530_s1, %s530_s1, %s531_s28  }
  0xa1   :  { %527 = dma.done.wait [#allocation5], 256  }
  0xa2   :  { %528 = vsyncadd [#allocation5], 4294967040 }
  0xa3   :  { %383 = vsyncpa [#allocation4], 1 }
  0xa4   :  { %384 = vsyncpa [#allocation5], 1 }
  0xa5   :  { %385 = vsyncpa [#allocation6], 1 }
  0xa6   :  { %386 = vsyncpa [#allocation9], 1 }

</bundles_post_ra>
